<compile_context>
chip_gen: v6e
topology: v6e:2x2x1
jax: 0.10.0
libtpu: 0.0.40
codegen_flags: <defaults>
</compile_context>

<pallas_src>
import functools

import jax
import jax.numpy as jnp
import numpy as np
from jax.experimental import pallas as pl
from jax.experimental.pallas import tpu as pltpu

BN_EPS = 1e-5
_VMEM_BUDGET = 40 * 1024 * 1024   # conservative double-buffer budget (ok on v7x 64 MiB/TC)


def _round_up(x, m):
    return (x + m - 1) // m * m


# -------- pass 1: conv matmul + bf16 y store + per-tile batch statistics --------
def _conv_stats_kernel(p_ref, w_ref, y_ref, s1_ref, s2_ref):
    # p_ref: (TM, K) bf16 im2col patches; w_ref: (K, C_pad) bf16 weights.
    # y_ref: (TM, C_pad) bf16 conv output (consumed by pass 2 -> no re-matmul).
    # s1_ref / s2_ref: (1, 1, C_pad) f32 per-tile sum / sum-of-squares over rows.
    y = jnp.dot(p_ref[...], w_ref[...], preferred_element_type=jnp.float32)
    y_ref[...] = y.astype(y_ref.dtype)
    s1_ref[0] = jnp.sum(y, axis=0, keepdims=True)
    s2_ref[0] = jnp.sum(y * y, axis=0, keepdims=True)


# -------- pass 2: fused BatchNorm affine + ELU (pure element-wise streaming) -----
def _bn_elu_kernel(y_ref, scale_ref, shift_ref, o_ref):
    y = y_ref[...].astype(jnp.float32) * scale_ref[...] + shift_ref[...]
    # ELU(alpha=1); exp(min(y,0)) keeps the not-taken branch finite.
    o_ref[...] = jnp.where(y > 0.0, y,
                           jnp.exp(jnp.minimum(y, 0.0)) - 1.0).astype(o_ref.dtype)


def _im2col(x_nchw, stride, pad_hw):
    """Extract 3x3 patches. Returns (M, Cin*9) (input dtype preserved), Hout, Wout."""
    N, C, H, W = x_nchw.shape
    (pt, pb), (plft, prgt) = pad_hw
    xp = jnp.pad(x_nchw, ((0, 0), (0, 0), (pt, pb), (plft, prgt)))
    Hp, Wp = H + pt + pb, W + plft + prgt
    Hout = (Hp - 3) // stride + 1
    Wout = (Wp - 3) // stride + 1
    cols = []
    for i in range(3):
        for j in range(3):
            cols.append(
                xp[:, :, i : i + stride * (Hout - 1) + 1 : stride,
                           j : j + stride * (Wout - 1) + 1 : stride]
            )
    # (N, C, 9, Hout, Wout) -> (N, Hout, Wout, C, 9) -> (M, C*9)
    p = jnp.stack(cols, axis=2)
    p = p.transpose(0, 3, 4, 1, 2).reshape(N * Hout * Wout, C * 9)
    return p, Hout, Wout


@functools.partial(jax.jit, static_argnames=("pooling", "block_m"))
def conv_block(x, weight, bias, gamma, beta, *, pooling=False, block_m=1024):
    """x: (N, Cin, H, W); weight: (Cout, Cin, 3, 3); bias/gamma/beta: (Cout,).

    `bias` is accepted for API parity but not applied: a conv bias is a
    mathematical no-op under the training-mode BatchNorm that follows (it is
    removed exactly by the mean subtraction and does not change the variance).
    """
    del bias
    N, Cin, H, W = x.shape
    Cout = weight.shape[0]

    xb = x.astype(jnp.bfloat16)   # cast BEFORE im2col -> half the wrapper traffic
    if pooling:
        # ZeroPad2d([0,1,0,1]) then Conv2d(k=3, stride=2, pad=0)
        patches, Hout, Wout = _im2col(xb, stride=2, pad_hw=((0, 1), (0, 1)))
    else:
        # Conv2d(k=3, stride=1, pad=1)
        patches, Hout, Wout = _im2col(xb, stride=1, pad_hw=((1, 1), (1, 1)))
    # TODO(synk): the im2col patch matrix (9x pixel duplication) is still built in
    # HBM by the wrapper; an in-kernel 9-tap accumulation over a halo'd NHWC block
    # would cut the patch read traffic a further ~9x.

    M, K = patches.shape          # K = Cin*9, left UNPADDED (full-dim BlockSpec)
    C_pad = _round_up(Cout, 128)

    # ---- tile selection -------------------------------------------------------
    tm = min(_round_up(block_m, 8), _round_up(M, 8))
    # >= 2 grid steps so the "parallel" axis shards across v7x's two TensorCores.
    if M > 8 and tm >= _round_up(M, 8):
        tm = _round_up(-(-M // 2), 8)

    def p1_footprint(t):
        return (2 * t * K * 2          # patch blocks (double-buffered, bf16)
                + 2 * K * C_pad * 2    # weight block (double-buffered, bf16)
                + 2 * t * C_pad * 2    # y output blocks (bf16)
                + 4 * C_pad * 4 * 2)   # stats blocks (f32)

    while tm > 8 and p1_footprint(tm) > _VMEM_BUDGET:
        tm = _round_up(tm // 2, 8)

    M_pad = _round_up(M, tm)
    n_tiles = M_pad // tm
    vmem_limit = int(min(48 * 1024 * 1024,
                         max(16 * 1024 * 1024, 2 * p1_footprint(tm))))

    # Zero row padding only (zero rows contribute exactly 0 to matmul and stats).
    p_pad = jnp.pad(patches, ((0, M_pad - M), (0, 0)))
    w2d = jnp.pad(weight.reshape(Cout, K).T,
                  ((0, 0), (0, C_pad - Cout))).astype(jnp.bfloat16)

    matmul_flops = 2 * M_pad * K * C_pad
    p_bytes = M_pad * K * 2
    w_bytes = K * C_pad * 2
    y_bytes = M_pad * C_pad * 2

    # ---- pass 1: conv matmul, bf16 y, per-tile channel sums / sums of squares --
    y_flat, s1, s2 = pl.pallas_call(
        _conv_stats_kernel,
        out_shape=(jax.ShapeDtypeStruct((M_pad, C_pad), jnp.bfloat16),
                   jax.ShapeDtypeStruct((n_tiles, 1, C_pad), jnp.float32),
                   jax.ShapeDtypeStruct((n_tiles, 1, C_pad), jnp.float32)),
        grid=(n_tiles,),
        in_specs=[
            pl.BlockSpec((tm, K), lambda i: (i, 0)),
            pl.BlockSpec((K, C_pad), lambda i: (0, 0)),
        ],
        out_specs=(
            pl.BlockSpec((tm, C_pad), lambda i: (i, 0)),
            pl.BlockSpec((1, 1, C_pad), lambda i: (i, 0, 0)),
            pl.BlockSpec((1, 1, C_pad), lambda i: (i, 0, 0)),
        ),
        compiler_params=pltpu.CompilerParams(
            dimension_semantics=("parallel",),
            vmem_limit_bytes=vmem_limit),
        cost_estimate=pl.CostEstimate(
            flops=matmul_flops + 3 * M_pad * C_pad,
            transcendentals=0,
            bytes_accessed=p_bytes + w_bytes + y_bytes + 2 * n_tiles * C_pad * 4),
    )(p_pad, w2d)

    # Tiny cross-tile reduction + BN affine folding in plain JAX (glue).
    # NOTE: E[y^2]-E[y]^2 in f32; clamp guards against cancellation for
    # near-constant channels.
    mean = jnp.sum(s1[:, 0, :], axis=0) / M            # divide by the TRUE M
    var = jnp.maximum(jnp.sum(s2[:, 0, :], axis=0) / M - mean * mean, 0.0)
    inv_std = jax.lax.rsqrt(var + BN_EPS)
    g = jnp.pad(gamma.astype(jnp.float32), (0, C_pad - Cout))
    b = jnp.pad(beta.astype(jnp.float32), (0, C_pad - Cout))
    scale = (g * inv_std).reshape(1, C_pad)
    shift = (b - mean * g * inv_std).reshape(1, C_pad)

    # ---- pass 2: streaming BN scale/shift + ELU, lane-dense store --------------
    out_flat = pl.pallas_call(
        _bn_elu_kernel,
        out_shape=jax.ShapeDtypeStruct((M_pad, C_pad), jnp.float32),
        grid=(n_tiles,),
        in_specs=[
            pl.BlockSpec((tm, C_pad), lambda i: (i, 0)),
            pl.BlockSpec((1, C_pad), lambda i: (0, 0)),
            pl.BlockSpec((1, C_pad), lambda i: (0, 0)),
        ],
        out_specs=pl.BlockSpec((tm, C_pad), lambda i: (i, 0)),
        compiler_params=pltpu.CompilerParams(
            dimension_semantics=("parallel",),
            vmem_limit_bytes=vmem_limit),
        cost_estimate=pl.CostEstimate(
            flops=4 * M_pad * C_pad,
            transcendentals=M_pad * C_pad,
            bytes_accessed=y_bytes + 2 * C_pad * 4 + M_pad * C_pad * 4),
    )(y_flat, scale, shift)
    # TODO(synk): if the consumer accepts NHWC/bf16, emit bf16 directly from the
    # kernel and skip the NCHW transpose to halve pass-2 write + glue traffic.

    # (M_pad, C_pad) -> (M, Cout) -> (N, Hout, Wout, Cout) -> NCHW
    return out_flat[:M, :Cout].reshape(N, Hout, Wout, Cout).transpose(0, 3, 1, 2)


def _reference(x, weight, bias, gamma, beta, pooling):
    if pooling:
        xp = jnp.pad(x, ((0, 0), (0, 0), (0, 1), (0, 1)))
        y = jax.lax.conv_general_dilated(
            xp, weight, (2, 2), "VALID", dimension_numbers=("NCHW", "OIHW", "NCHW"))
    else:
        y = jax.lax.conv_general_dilated(
            x, weight, (1, 1), ((1, 1), (1, 1)),
            dimension_numbers=("NCHW", "OIHW", "NCHW"))
    y = y + bias[None, :, None, None]
    mean = y.mean(axis=(0, 2, 3), keepdims=True)
    var = ((y - mean) ** 2).mean(axis=(0, 2, 3), keepdims=True)
    y = (y - mean) / jnp.sqrt(var + BN_EPS)
    y = y * gamma[None, :, None, None] + beta[None, :, None, None]
    return jnp.where(y > 0.0, y, jnp.exp(y) - 1.0)


if __name__ == "__main__":
    key = jax.random.PRNGKey(0)
    k_x, k_w, k_b = jax.random.split(key, 3)

    N, Cin, H, W = 2, 4, 16, 16
    Cout = 8

    x = jax.random.normal(k_x, (N, Cin, H, W), dtype=jnp.float32)
    # PyTorch default BN init: gamma=1, beta=0.
    weight = jax.random.normal(k_w, (Cout, Cin, 3, 3), dtype=jnp.float32) * 0.1
    bias = jax.random.normal(k_b, (Cout,), dtype=jnp.float32) * 0.1
    gamma = jnp.ones((Cout,), dtype=jnp.float32)
    beta = jnp.zeros((Cout,), dtype=jnp.float32)

    for pooling in (False, True):
        for bm in (1024, 128):   # bm=128 exercises the multi-tile grid path
            out = conv_block(x, weight, bias, gamma, beta,
                             pooling=pooling, block_m=bm)
            out = jax.block_until_ready(out)
            expected_shape = (N, Cout, H // 2, W // 2) if pooling else (N, Cout, H, W)
            assert out.shape == expected_shape, (out.shape, expected_shape)
            ref = _reference(x, weight, bias, gamma, beta, pooling)
            # bf16 matmul operands + bf16 y intermediate (f32 accumulate/affine)
            # -> relaxed tolerance vs f32 reference.
            np.testing.assert_allclose(np.asarray(out), np.asarray(ref),
                                       rtol=2e-2, atol=3e-2)

    print("KERNEL_OK")
</pallas_src>

<mosaic_0001>
module attributes {stable_mosaic.version = 11 : i64} {
  func.func @_bn_elu_kernel(%arg0: i32, %arg1: memref<256x128xbf16, #tpu.memory_space<vmem>>, %arg2: memref<1x128xf32, #tpu.memory_space<vmem>>, %arg3: memref<1x128xf32, #tpu.memory_space<vmem>>, %arg4: memref<256x128xf32, #tpu.memory_space<vmem>>) attributes {dimension_semantics = [#tpu.dimension_semantics<parallel>], iteration_bounds = array<i64: 2>, scalar_prefetch = 0 : i64, scratch_operands = 0 : i64, tpu.core_type = #tpu.core_type<tc>, window_params = [{transform_indices = @transform_0, window_bounds = array<i64: 256, 128>}, {pipeline_mode = #tpu.pipeline_mode<synchronous>, transform_indices = @transform_1, window_bounds = array<i64: 1, 128>}, {pipeline_mode = #tpu.pipeline_mode<synchronous>, transform_indices = @transform_2, window_bounds = array<i64: 1, 128>}, {transform_indices = @transform_3, window_bounds = array<i64: 256, 128>}]} {
    %c0 = arith.constant 0 : index
    %c0_0 = arith.constant 0 : index
    %0 = vector.load %arg1[%c0, %c0_0] : memref<256x128xbf16, #tpu.memory_space<vmem>>, vector<256x128xbf16>
    %1 = arith.extf %0 : vector<256x128xbf16> to vector<256x128xf32>
    %c0_1 = arith.constant 0 : index
    %c0_2 = arith.constant 0 : index
    %2 = vector.load %arg2[%c0_1, %c0_2] : memref<1x128xf32, #tpu.memory_space<vmem>>, vector<1x128xf32>
    %3 = vector.broadcast %2 : vector<1x128xf32> to vector<256x128xf32>
    %4 = arith.mulf %1, %3 : vector<256x128xf32>
    %c0_3 = arith.constant 0 : index
    %c0_4 = arith.constant 0 : index
    %5 = vector.load %arg3[%c0_3, %c0_4] : memref<1x128xf32, #tpu.memory_space<vmem>>, vector<1x128xf32>
    %6 = vector.broadcast %5 : vector<1x128xf32> to vector<256x128xf32>
    %7 = arith.addf %4, %6 : vector<256x128xf32>
    %cst = arith.constant 0.000000e+00 : f32
    %8 = vector.broadcast %cst : f32 to vector<256x128xf32>
    %9 = arith.cmpf ogt, %7, %8 : vector<256x128xf32>
    %cst_5 = arith.constant 0.000000e+00 : f32
    %10 = vector.broadcast %cst_5 : f32 to vector<256x128xf32>
    %11 = arith.minimumf %7, %10 : vector<256x128xf32>
    %12 = math.exp %11 : vector<256x128xf32>
    %cst_6 = arith.constant 1.000000e+00 : f32
    %13 = vector.broadcast %cst_6 : f32 to vector<256x128xf32>
    %14 = arith.subf %12, %13 : vector<256x128xf32>
    %15 = arith.select %9, %7, %14 : vector<256x128xi1>, vector<256x128xf32>
    %c0_7 = arith.constant 0 : index
    %c0_8 = arith.constant 0 : index
    %16 = vector.load %arg4[%c0_7, %c0_8] : memref<256x128xf32, #tpu.memory_space<vmem>>, vector<256x128xf32>
    tpu.vector_store %arg4[%c0_7, %c0_8], %15 {strides = array<i32>} : memref<256x128xf32, #tpu.memory_space<vmem>>, vector<256x128xf32>,
    return
  }
  func.func @transform_0(%arg0: i32) -> (i32, i32) {
    %c0_i32 = arith.constant 0 : i32
    %c0_i32_0 = arith.constant 0 : i32
    return %arg0, %c0_i32 : i32, i32
  }
  func.func @transform_1(%arg0: i32) -> (i32, i32) {
    %c0_i32 = arith.constant 0 : i32
    %c0_i32_0 = arith.constant 0 : i32
    %c0_i32_1 = arith.constant 0 : i32
    return %c0_i32, %c0_i32_0 : i32, i32
  }
  func.func @transform_2(%arg0: i32) -> (i32, i32) {
    %c0_i32 = arith.constant 0 : i32
    %c0_i32_0 = arith.constant 0 : i32
    %c0_i32_1 = arith.constant 0 : i32
    return %c0_i32, %c0_i32_0 : i32, i32
  }
  func.func @transform_3(%arg0: i32) -> (i32, i32) {
    %c0_i32 = arith.constant 0 : i32
    %c0_i32_0 = arith.constant 0 : i32
    return %arg0, %c0_i32 : i32, i32
  }
}

module attributes {stable_mosaic.version = 11 : i64} {
  func.func @_conv_stats_kernel(%arg0: i32, %arg1: memref<256x36xbf16, #tpu.memory_space<vmem>>, %arg2: memref<36x128xbf16, #tpu.memory_space<vmem>>, %arg3: memref<256x128xbf16, #tpu.memory_space<vmem>>, %arg4: memref<1x1x128xf32, #tpu.memory_space<vmem>>, %arg5: memref<1x1x128xf32, #tpu.memory_space<vmem>>) attributes {dimension_semantics = [#tpu.dimension_semantics<parallel>], iteration_bounds = array<i64: 2>, scalar_prefetch = 0 : i64, scratch_operands = 0 : i64, tpu.core_type = #tpu.core_type<tc>, window_params = [{transform_indices = @transform_0, window_bounds = array<i64: 256, 36>}, {pipeline_mode = #tpu.pipeline_mode<synchronous>, transform_indices = @transform_1, window_bounds = array<i64: 36, 128>}, {transform_indices = @transform_2, window_bounds = array<i64: 256, 128>}, {transform_indices = @transform_3, window_bounds = array<i64: 1, 1, 128>}, {transform_indices = @transform_4, window_bounds = array<i64: 1, 1, 128>}]} {
    %c0 = arith.constant 0 : index
    %c0_0 = arith.constant 0 : index
    %0 = vector.load %arg1[%c0, %c0_0] : memref<256x36xbf16, #tpu.memory_space<vmem>>, vector<256x36xbf16>
    %c0_1 = arith.constant 0 : index
    %c0_2 = arith.constant 0 : index
    %1 = vector.load %arg2[%c0_1, %c0_2] : memref<36x128xbf16, #tpu.memory_space<vmem>>, vector<36x128xbf16>
    %cst = arith.constant dense<0.000000e+00> : vector<256x128xf32>
    %2 = tpu.matmul %0, %1, %cst {dimension_numbers = #tpu.dot_dimension_numbers<[1], [0], [0], [1], [0, 0, 1, 1], [], []>} : vector<256x36xbf16>, vector<36x128xbf16>, vector<256x128xf32> -> vector<256x128xf32>
    %3 = arith.truncf %2 : vector<256x128xf32> to vector<256x128xbf16>
    %c0_3 = arith.constant 0 : index
    %c0_4 = arith.constant 0 : index
    %4 = vector.load %arg3[%c0_3, %c0_4] : memref<256x128xbf16, #tpu.memory_space<vmem>>, vector<256x128xbf16>
    tpu.vector_store %arg3[%c0_3, %c0_4], %3 {strides = array<i32>} : memref<256x128xbf16, #tpu.memory_space<vmem>>, vector<256x128xbf16>,
    %cst_5 = arith.constant dense<0.000000e+00> : vector<128xf32>
    %5 = vector.multi_reduction <add>, %2, %cst_5 [0] : vector<256x128xf32> to vector<128xf32>
    %6 = vector.shape_cast %5 : vector<128xf32> to vector<1x128xf32>
    %c0_6 = arith.constant 0 : index
    %c0_7 = arith.constant 0 : index
    %c0_8 = arith.constant 0 : index
    %7 = vector.load %arg4[%c0_6, %c0_7, %c0_8] : memref<1x1x128xf32, #tpu.memory_space<vmem>>, vector<1x1x128xf32>
    %8 = vector.shape_cast %7 : vector<1x1x128xf32> to vector<1x128xf32>
    %9 = vector.shape_cast %6 : vector<1x128xf32> to vector<1x1x128xf32>
    tpu.vector_store %arg4[%c0_6, %c0_7, %c0_8], %9 {strides = array<i32>} : memref<1x1x128xf32, #tpu.memory_space<vmem>>, vector<1x1x128xf32>,
    %10 = arith.mulf %2, %2 : vector<256x128xf32>
    %cst_9 = arith.constant dense<0.000000e+00> : vector<128xf32>
    %11 = vector.multi_reduction <add>, %10, %cst_9 [0] : vector<256x128xf32> to vector<128xf32>
    %12 = vector.shape_cast %11 : vector<128xf32> to vector<1x128xf32>
    %c0_10 = arith.constant 0 : index
    %c0_11 = arith.constant 0 : index
    %c0_12 = arith.constant 0 : index
    %13 = vector.load %arg5[%c0_10, %c0_11, %c0_12] : memref<1x1x128xf32, #tpu.memory_space<vmem>>, vector<1x1x128xf32>
    %14 = vector.shape_cast %13 : vector<1x1x128xf32> to vector<1x128xf32>
    %15 = vector.shape_cast %12 : vector<1x128xf32> to vector<1x1x128xf32>
    tpu.vector_store %arg5[%c0_10, %c0_11, %c0_12], %15 {strides = array<i32>} : memref<1x1x128xf32, #tpu.memory_space<vmem>>, vector<1x1x128xf32>,
    return
  }
  func.func @transform_0(%arg0: i32) -> (i32, i32) {
    %c0_i32 = arith.constant 0 : i32
    %c0_i32_0 = arith.constant 0 : i32
    return %arg0, %c0_i32 : i32, i32
  }
  func.func @transform_1(%arg0: i32) -> (i32, i32) {
    %c0_i32 = arith.constant 0 : i32
    %c0_i32_0 = arith.constant 0 : i32
    %c0_i32_1 = arith.constant 0 : i32
    return %c0_i32, %c0_i32_0 : i32, i32
  }
  func.func @transform_2(%arg0: i32) -> (i32, i32) {
    %c0_i32 = arith.constant 0 : i32
    %c0_i32_0 = arith.constant 0 : i32
    return %arg0, %c0_i32 : i32, i32
  }
  func.func @transform_3(%arg0: i32) -> (i32, i32, i32) {
    %c0_i32 = arith.constant 0 : i32
    %c0_i32_0 = arith.constant 0 : i32
    %c0_i32_1 = arith.constant 0 : i32
    return %arg0, %c0_i32, %c0_i32_0 : i32, i32, i32
  }
  func.func @transform_4(%arg0: i32) -> (i32, i32, i32) {
    %c0_i32 = arith.constant 0 : i32
    %c0_i32_0 = arith.constant 0 : i32
    %c0_i32_1 = arith.constant 0 : i32
    return %arg0, %c0_i32, %c0_i32_0 : i32, i32, i32
  }
}

</mosaic_0001>

<bundles_post_ra>
// kernel: conv_block.3
= control target key start
LH: loop header
LB: loop body
LE: loop exit
PB: predicated region body
PF: predicated region fallthrough
CT: control target
= control target key end

     0   :  { %s820_s12 = smov 0   ;;  %s1171_s0 = inlined_call_operand.vmem [shape: bf16[512,128], index: 0, kind: input, shape index: {}]   ;;  %s1172_s1 = inlined_call_operand.vmem [shape: f32[1,128], index: 1, kind: input, shape index: {}]   ;;  %s1173_s2 = inlined_call_operand.vmem [shape: f32[1,128], index: 2, kind: input, shape index: {}]   ;;  %s1174_s3 = inlined_call_operand.vmem [shape: f32[512,128], index: 3, kind: output, shape index: {}]  }
   0x1 LB: > { %s596_s13 = sadd.s32 4294967295, %s798_s12   ;;  %p600_p0 = scmp.ge.s32.totalorder %s798_s12, 1  ;;  %s798_s12 = sphi %s820_s12, %s13_s12  }
   0x2   : > { %p138_p1 = scmp.lt.s32.totalorder %s798_s12, 3 }
   0x4   : > { %p139_p2 = pnand %p600_p0, %p138_p1 }
   0x5   : > { %s601_s14 = sshll.u32 (!%p139_p2), %s596_s13, 5 }
   0x6   : > { %142 = sbr.rel (%p139_p2) target bundleno = 100 (0x64), region = 32  ;;  %p163_p3 = scmp.lt.s32.totalorder (!%p139_p2), %s601_s14, 63 }
   0xb   : > { %s1176_s14 = smov (!%p163_p3, %s601_s14), 63  ;;  %v839_v0 = vld [vmem:[%s1172_s1] ss:$0 sm:$0xff] }
   0xc   : > { %s602_s15 = sshll.u32 %s1176_s14, 2  ;;  %v848_v9 = vld [vmem:[%s1173_s2] ss:$0 sm:$0xff]  ;;  %s604_s23 = sshll.u32 %s1176_s14, 3 }
   0xd   : > { %s834_s18 = scalar_lea.vmem %s1171_s0, %s602_s15  ;;  %s939_s26 = scalar_lea.vmem %s1174_s3, %s604_s23 }
   0xe   : > { %v642_v1 = vld [vmem:[%s834_s18] sm:$0xff]   ;;  %v705_v2 = vld [vmem:[%s834_s18 + $0x8] sm:$0xff]   ;;  %v706_v3 = vld [vmem:[%s834_s18 + $0x10] sm:$0xff]  }
   0xf   : > { %v643_v4 = vunpack.c.l.bf16 %v642_v1  ;;  %v644_v5 = vunpack.c.h.bf16 %v642_v1  ;;  %v647_v6 = vunpack.c.l.bf16 %v705_v2  ;;  %v648_v7 = vunpack.c.h.bf16 %v705_v2  ;;  %v707_v8 = vld [vmem:[%s834_s18 + $0x18] sm:$0xff]   ;;  %v708_v40 = vld [vmem:[%s834_s18 + $0x20] sm:$0xff]   ;;  %v709_v43 = vld [vmem:[%s834_s18 + $0x28] sm:$0xff]  }
  0x10   : > { %v651_v10 = vunpack.c.l.bf16 %v706_v3  ;;  %v652_v11 = vunpack.c.h.bf16 %v706_v3  ;;  %v655_v12 = vunpack.c.l.bf16 %v707_v8  ;;  %v656_v13 = vunpack.c.h.bf16 %v707_v8  ;;  %v710_v46 = vld [vmem:[%s834_s18 + $0x30] sm:$0xff]  }
  0x11   : > { %v245_v14 = vmul.f32 %v643_v4, %v839_v0  ;;  %v246_v15 = vmul.f32 %v644_v5, %v839_v0  ;;  %v247_v16 = vmul.f32 %v647_v6, %v839_v0  ;;  %v248_v17 = vmul.f32 %v648_v7, %v839_v0  ;;  %v711_v4 = vld [vmem:[%s834_s18 + $0x38] sm:$0xff]  }
  0x12   : > { %v249_v18 = vmul.f32 %v651_v10, %v839_v0  ;;  %v250_v19 = vmul.f32 %v652_v11, %v839_v0  ;;  %v251_v20 = vmul.f32 %v655_v12, %v839_v0  ;;  %v252_v21 = vmul.f32 %v656_v13, %v839_v0 }
  0x13   : > { %v859_v22 = vadd.f32 %v848_v9, %v245_v14  ;;  %v862_v23 = vadd.f32 %v848_v9, %v246_v15  ;;  %v865_v24 = vadd.f32 %v848_v9, %v247_v16  ;;  %v868_v25 = vadd.f32 %v848_v9, %v248_v17  ;;  %v712_v16 = vld [vmem:[%s834_s18 + $0x40] sm:$0xff]  }
  0x14   : > { %v871_v26 = vadd.f32 %v848_v9, %v249_v18  ;;  %v874_v27 = vadd.f32 %v848_v9, %v250_v19  ;;  %v879_v30 = vadd.f32 %v848_v9, %v251_v20  ;;  %v884_v33 = vadd.f32 %v848_v9, %v252_v21 }
  0x15   : > { %v348_v28 = vmin.f32 %v859_v22, 0.0  ;;  %v349_v29 = vmin.f32 %v862_v23, 0.0  ;;  %v350_v31 = vmin.f32 %v865_v24, 0.0  ;;  %v351_v32 = vmin.f32 %v868_v25, 0.0 }
  0x16   : > { %v352_v36 = vmin.f32 %v871_v26, 0.0  ;;  %v353_v39 = vmin.f32 %v874_v27, 0.0  ;;  %v354_v42 = vmin.f32 %v879_v30, 0.0  ;;  %v355_v45 = vmin.f32 %v884_v33, 0.0 }
  0x17   : > { %v380_v34 = vmul.f32 1.442695, %v348_v28  ;;  %v382_v35 = vmul.f32 1.442695, %v349_v29  ;;  %v384_v37 = vmul.f32 1.442695, %v350_v31  ;;  %v659_v48 = vunpack.c.l.bf16 %v708_v40 }
  0x18   : > { %v386_v38 = vmul.f32 1.442695, %v351_v32  ;;  %v388_v41 = vmul.f32 1.442695, %v352_v36  ;;  %v390_v44 = vmul.f32 1.442695, %v353_v39  ;;  %v660_v49 = vunpack.c.h.bf16 %v708_v40 }
  0x19   : > { %728 = vpow2.f32 %v380_v34  ;;  %v392_v47 = vmul.f32 1.442695, %v354_v42  ;;  %v394_v50 = vmul.f32 1.442695, %v355_v45  ;;  %v663_v51 = vunpack.c.l.bf16 %v709_v43 }
  0x1a   : > { %730 = vpow2.f32 %v382_v35  ;;  %v664_v52 = vunpack.c.h.bf16 %v709_v43  ;;  %v253_v53 = vmul.f32 %v659_v48, %v839_v0  ;;  %v254_v54 = vmul.f32 %v660_v49, %v839_v0 }
  0x1b   : > { %732 = vpow2.f32 %v384_v37  ;;  %v667_v55 = vunpack.c.l.bf16 %v710_v46  ;;  %vm316_vm0 = vcmp.gt.f32.partialorder %v859_v22, 0.0  ;;  %v255_v56 = vmul.f32 %v663_v51, %v839_v0  ;;  %v713_v51 = vld [vmem:[%s834_s18 + $0x48] sm:$0xff]  }
  0x1c   : > { %734 = vpow2.f32 %v386_v38  ;;  %v256_v57 = vmul.f32 %v664_v52, %v839_v0  ;;  %v668_v58 = vunpack.c.h.bf16 %v710_v46  ;;  %v899_v59 = vadd.f32 %v848_v9, %v253_v53 }
  0x1d   : > { %736 = vpow2.f32 %v388_v41  ;;  %v902_v60 = vadd.f32 %v848_v9, %v254_v54  ;;  %v257_v61 = vmul.f32 %v667_v55, %v839_v0  ;;  %v906_v62 = vadd.f32 %v848_v9, %v255_v56 }
  0x1e   : > { %738 = vpow2.f32 %v390_v44  ;;  %v909_v63 = vadd.f32 %v848_v9, %v256_v57  ;;  %v258_v1 = vmul.f32 %v668_v58, %v839_v0  ;;  %vm317_vm1 = vcmp.gt.f32.partialorder %v862_v23, 0.0 }
  0x1f   : > { %740 = vpow2.f32 %v392_v47  ;;  %vm318_vm2 = vcmp.gt.f32.partialorder %v865_v24, 0.0  ;;  %v356_v2 = vmin.f32 %v899_v59, 0.0  ;;  %v357_v3 = vmin.f32 %v902_v60, 0.0 }
  0x20   : > { %742 = vpow2.f32 %v394_v50  ;;  %vm319_vm3 = vcmp.gt.f32.partialorder %v868_v25, 0.0  ;;  %vm320_vm4 = vcmp.gt.f32.partialorder %v871_v26, 0.0  ;;  %v358_v5 = vmin.f32 %v906_v62, 0.0 }
  0x21   : > { %v359_v6 = vmin.f32 %v909_v63, 0.0  ;;  %vm321_vm5 = vcmp.gt.f32.partialorder %v874_v27, 0.0  ;;  %v396_v7 = vmul.f32 1.442695, %v356_v2  ;;  %v398_v8 = vmul.f32 1.442695, %v357_v3 }
  0x22   : > { %v923_v10 = vadd.f32 %v848_v9, %v257_v61  ;;  %v926_v11 = vadd.f32 %v848_v9, %v258_v1  ;;  %v400_v12 = vmul.f32 1.442695, %v358_v5  ;;  %v671_v14 = vunpack.c.l.bf16 %v711_v4  ;;  %v981_v1 = vld [vmem:[%s834_s18 + $0x50] sm:$0xff]   ;;  %v715_v5 = vld [vmem:[%s834_s18 + $0x58] sm:$0xff]  }
  0x23   : > { %v402_v13 = vmul.f32 1.442695, %v359_v6  ;;  %v672_v15 = vunpack.c.h.bf16 %v711_v4  ;;  %vm322_vm6 = vcmp.gt.f32.partialorder %v879_v30, 0.0  ;;  %vm323_vm7 = vcmp.gt.f32.partialorder %v884_v33, 0.0 }
  0x24   : > { %744 = vpow2.f32 %v396_v7  ;;  %v360_v17 = vmin.f32 %v923_v10, 0.0  ;;  %v361_v19 = vmin.f32 %v926_v11, 0.0  ;;  %v259_v20 = vmul.f32 %v671_v14, %v839_v0 }
  0x25   : > { %746 = vpow2.f32 %v398_v8  ;;  %v260_v21 = vmul.f32 %v672_v15, %v839_v0  ;;  %v675_v32 = vunpack.c.l.bf16 %v712_v16  ;;  %vm324_vm8 = vcmp.gt.f32.partialorder %v899_v59, 0.0 }
  0x26   : > { %v729_v18 = vpop.eup %728  ;;  %748 = vpow2.f32 %v400_v12  ;;  %v404_v31 = vmul.f32 1.442695, %v360_v17  ;;  %v406_v36 = vmul.f32 1.442695, %v361_v19  ;;  %v942_v37 = vadd.f32 %v848_v9, %v259_v20 }
  0x27   : > { %v731_v28 = vpop.eup %730  ;;  %v607_v29 = vadd.f32 -1.0, %v729_v18  ;;  %750 = vpow2.f32 %v402_v13  ;;  %v948_v41 = vadd.f32 %v848_v9, %v260_v21  ;;  %vm325_vm9 = vcmp.gt.f32.partialorder %v902_v60, 0.0 }
  0x28   : > { %v733_v34 = vpop.eup %732  ;;  %v608_v35 = vadd.f32 -1.0, %v731_v28  ;;  %752 = vpow2.f32 %v404_v31  ;;  %v362_v47 = vmin.f32 %v942_v37, 0.0  ;;  %vm326_vm10 = vcmp.gt.f32.partialorder %v906_v62, 0.0 }
  0x29   : > { %v735_v38 = vpop.eup %734  ;;  %v476_v39 = vsel %vm316_vm0, %v859_v22, %v607_v29  ;;  %v609_v40 = vadd.f32 -1.0, %v733_v34  ;;  %754 = vpow2.f32 %v406_v36  ;;  %v363_v50 = vmin.f32 %v948_v41, 0.0 }
  0x2a   : > { %v737_v42 = vpop.eup %736  ;;  %508 = vst [vmem:[%s939_s26] sm:$0xff] %v476_v39  ;;  %v477_v43 = vsel %vm317_vm1, %v862_v23, %v608_v35  ;;  %v610_v44 = vadd.f32 -1.0, %v735_v38  ;;  %v408_v55 = vmul.f32 1.442695, %v362_v47  ;;  %v679_v3 = vunpack.c.l.bf16 %v713_v51  ;;  %v716_v47 = vld [vmem:[%s834_s18 + $0x60] sm:$0xff]  }
  0x2b   : > { %v739_v45 = vpop.eup %738  ;;  %509 = vst [vmem:[%s939_s26 + $0x8] sm:$0xff] %v477_v43  ;;  %v478_v22 = vsel %vm318_vm2, %v865_v24, %v609_v40  ;;  %v611_v46 = vadd.f32 -1.0, %v737_v42  ;;  %v261_v24 = vmul.f32 %v675_v32, %v839_v0  ;;  %v410_v58 = vmul.f32 1.442695, %v363_v50 }
  0x2c   : > { %v741_v48 = vpop.eup %740  ;;  %510 = vst [vmem:[%s939_s26 + $0x10] sm:$0xff] %v478_v22  ;;  %v479_v23 = vsel %vm319_vm3, %v868_v25, %v610_v44  ;;  %v612_v49 = vadd.f32 -1.0, %v739_v45  ;;  %v676_v25 = vunpack.c.h.bf16 %v712_v16  ;;  %756 = vpow2.f32 %v408_v55 }
  0x2d   : > { %v743_v52 = vpop.eup %742  ;;  %511 = vst [vmem:[%s939_s26 + $0x18] sm:$0xff] %v479_v23  ;;  %v480_v53 = vsel %vm320_vm4, %v871_v26, %v611_v46  ;;  %v613_v54 = vadd.f32 -1.0, %v741_v48  ;;  %v978_v61 = vadd.f32 %v848_v9, %v261_v24  ;;  %vm327_vm11 = vcmp.gt.f32.partialorder %v909_v63, 0.0 }
  0x2e   : > { %512 = vst [vmem:[%s939_s26 + $0x20] sm:$0xff] %v480_v53  ;;  %v481_v56 = vsel %vm321_vm5, %v874_v27, %v612_v49  ;;  %v614_v57 = vadd.f32 -1.0, %v743_v52  ;;  %v262_v2 = vmul.f32 %v676_v25, %v839_v0  ;;  %758 = vpow2.f32 %v410_v58  ;;  %v717_v49 = vld [vmem:[%s834_s18 + $0x68] sm:$0xff]  }
  0x2f   : > { %513 = vst [vmem:[%s939_s26 + $0x28] sm:$0xff] %v481_v56  ;;  %v482_v26 = vsel %vm322_vm6, %v879_v30, %v613_v54  ;;  %v364_v4 = vmin.f32 %v978_v61, 0.0  ;;  %v263_v30 = vmul.f32 %v679_v3, %v839_v0  ;;  %v680_v7 = vunpack.c.h.bf16 %v713_v51 }
  0x30   : > { %514 = vst [vmem:[%s939_s26 + $0x30] sm:$0xff] %v482_v26  ;;  %v483_v27 = vsel %vm323_vm7, %v884_v33, %v614_v57  ;;  %v997_v6 = vadd.f32 %v848_v9, %v262_v2  ;;  %v683_v8 = vunpack.c.l.bf16 %v981_v1  ;;  %vm328_vm12 = vcmp.gt.f32.partialorder %v923_v10, 0.0 }
  0x31   : > { %515 = vst [vmem:[%s939_s26 + $0x38] sm:$0xff] %v483_v27  ;;  %v745_v12 = vpop.eup %744  ;;  %vm329_vm13 = vcmp.gt.f32.partialorder %v926_v11, 0.0  ;;  %v412_v33 = vmul.f32 1.442695, %v364_v4  ;;  %v684_v13 = vunpack.c.h.bf16 %v981_v1  ;;  %v1006_v17 = vadd.f32 %v848_v9, %v263_v30 }
  0x32   : > { %v747_v14 = vpop.eup %746  ;;  %v615_v15 = vadd.f32 -1.0, %v745_v12  ;;  %v365_v16 = vmin.f32 %v997_v6, 0.0  ;;  %v687_v18 = vunpack.c.l.bf16 %v715_v5  ;;  %v264_v21 = vmul.f32 %v680_v7, %v839_v0 }
  0x33   : > { %v749_v19 = vpop.eup %748  ;;  %v616_v20 = vadd.f32 -1.0, %v747_v14  ;;  %760 = vpow2.f32 %v412_v33  ;;  %v265_v28 = vmul.f32 %v683_v8, %v839_v0  ;;  %v688_v35 = vunpack.c.h.bf16 %v715_v5 }
  0x34   : > { %v751_v29 = vpop.eup %750  ;;  %v484_v31 = vsel %vm324_vm8, %v899_v59, %v615_v15  ;;  %v617_v32 = vadd.f32 -1.0, %v749_v19  ;;  %v414_v34 = vmul.f32 1.442695, %v365_v16  ;;  %v366_v40 = vmin.f32 %v1006_v17, 0.0  ;;  %v718_v15 = vld [vmem:[%s834_s18 + $0x70] sm:$0xff]  }
  0x35   : > { %v753_v36 = vpop.eup %752  ;;  %516 = vst [vmem:[%s939_s26 + $0x40] sm:$0xff] %v484_v31  ;;  %v485_v38 = vsel %vm325_vm9, %v902_v60, %v616_v20  ;;  %v618_v39 = vadd.f32 -1.0, %v751_v29  ;;  %v1019_v42 = vadd.f32 %v848_v9, %v264_v21  ;;  %v1026_v45 = vadd.f32 %v848_v9, %v265_v28 }
  0x36   : > { %v755_v43 = vpop.eup %754  ;;  %517 = vst [vmem:[%s939_s26 + $0x48] sm:$0xff] %v485_v38  ;;  %v486_v59 = vsel %vm326_vm10, %v906_v62, %v617_v32  ;;  %v619_v44 = vadd.f32 -1.0, %v753_v36  ;;  %762 = vpow2.f32 %v414_v34  ;;  %vm330_vm14 = vcmp.gt.f32.partialorder %v942_v37, 0.0 }
  0x37   : > { %518 = vst [vmem:[%s939_s26 + $0x50] sm:$0xff] %v486_v59  ;;  %v487_v60 = vsel %vm327_vm11, %v909_v63, %v618_v39  ;;  %v620_v22 = vadd.f32 -1.0, %v755_v43  ;;  %v416_v46 = vmul.f32 1.442695, %v366_v40  ;;  %vm331_vm15 = vcmp.gt.f32.partialorder %v948_v41, 0.0 }
  0x38   : > { %519 = vst [vmem:[%s939_s26 + $0x58] sm:$0xff] %v487_v60  ;;  %v488_v62 = vsel %vm328_vm12, %v923_v10, %v619_v44  ;;  %v367_v48 = vmin.f32 %v1019_v42, 0.0  ;;  %v368_v23 = vmin.f32 %v1026_v45, 0.0  ;;  %v266_v50 = vmul.f32 %v684_v13, %v839_v0 }
  0x39   : > { %520 = vst [vmem:[%s939_s26 + $0x60] sm:$0xff] %v488_v62  ;;  %v489_v63 = vsel %vm329_vm13, %v926_v11, %v620_v22  ;;  %764 = vpow2.f32 %v416_v46  ;;  %v267_v24 = vmul.f32 %v687_v18, %v839_v0  ;;  %v268_v52 = vmul.f32 %v688_v35, %v839_v0  ;;  %v757_v54 = vpop.eup %756 }
  0x3a   : > { %521 = vst [vmem:[%s939_s26 + $0x68] sm:$0xff] %v489_v63  ;;  %v418_v51 = vmul.f32 1.442695, %v367_v48  ;;  %v420_v10 = vmul.f32 1.442695, %v368_v23  ;;  %v691_v53 = vunpack.c.l.bf16 %v716_v47  ;;  %v1051_v55 = vadd.f32 %v848_v9, %v266_v50 }
  0x3b   : > { %v1054_v25 = vadd.f32 %v848_v9, %v267_v24  ;;  %v692_v11 = vunpack.c.h.bf16 %v716_v47  ;;  %v695_v56 = vunpack.c.l.bf16 %v717_v49  ;;  %v759_v57 = vpop.eup %758  ;;  %v621_v58 = vadd.f32 -1.0, %v757_v54 }
  0x3c   : > { %766 = vpow2.f32 %v418_v51  ;;  %v1057_v1 = vadd.f32 %v848_v9, %v268_v52  ;;  %v269_v26 = vmul.f32 %v691_v53, %v839_v0  ;;  %v622_v2 = vadd.f32 -1.0, %v759_v57 }
  0x3d   : > { %768 = vpow2.f32 %v420_v10  ;;  %v369_v3 = vmin.f32 %v1051_v55, 0.0  ;;  %v490_v27 = vsel %vm330_vm14, %v942_v37, %v621_v58  ;;  %vm332_vm0 = vcmp.gt.f32.partialorder %v978_v61, 0.0 }
  0x3e   : > { %v370_v4 = vmin.f32 %v1054_v25, 0.0  ;;  %522 = vst [vmem:[%s939_s26 + $0x70] sm:$0xff] %v490_v27  ;;  %v491_v5 = vsel %vm331_vm15, %v948_v41, %v622_v2  ;;  %v371_v7 = vmin.f32 %v1057_v1, 0.0  ;;  %v1072_v8 = vadd.f32 %v848_v9, %v269_v26 }
  0x3f   : > { %v422_v30 = vmul.f32 1.442695, %v369_v3  ;;  %523 = vst [vmem:[%s939_s26 + $0x78] sm:$0xff] %v491_v5  ;;  %v270_v37 = vmul.f32 %v692_v11, %v839_v0  ;;  %v271_v13 = vmul.f32 %v695_v56, %v839_v0  ;;  %v696_v14 = vunpack.c.h.bf16 %v717_v49 }
  0x40   : > { %v761_v12 = vpop.eup %760  ;;  %v424_v33 = vmul.f32 1.442695, %v370_v4  ;;  %vm333_vm1 = vcmp.gt.f32.partialorder %v997_v6, 0.0  ;;  %v426_v41 = vmul.f32 1.442695, %v371_v7  ;;  %v372_v18 = vmin.f32 %v1072_v8, 0.0 }
  0x41   : > { %v623_v16 = vadd.f32 -1.0, %v761_v12  ;;  %770 = vpow2.f32 %v422_v30  ;;  %v1081_v19 = vadd.f32 %v848_v9, %v270_v37  ;;  %v1084_v20 = vadd.f32 %v848_v9, %v271_v13 }
  0x42   : > { %772 = vpow2.f32 %v424_v33  ;;  %v272_v29 = vmul.f32 %v696_v14, %v839_v0  ;;  %v699_v31 = vunpack.c.l.bf16 %v718_v15  ;;  %v428_v34 = vmul.f32 1.442695, %v372_v18 }
  0x43   : > { %v763_v21 = vpop.eup %762  ;;  %v492_v28 = vsel %vm332_vm0, %v978_v61, %v623_v16  ;;  %774 = vpow2.f32 %v426_v41  ;;  %v373_v35 = vmin.f32 %v1081_v19, 0.0  ;;  %vm334_vm2 = vcmp.gt.f32.partialorder %v1006_v17, 0.0  ;;  %v719_v61 = vld [vmem:[%s834_s18 + $0x78] sm:$0xff]  }
  0x44   : > { %524 = vst [vmem:[%s939_s26 + $0x80] sm:$0xff] %v492_v28  ;;  %v624_v32 = vadd.f32 -1.0, %v763_v21  ;;  %v374_v36 = vmin.f32 %v1084_v20, 0.0  ;;  %v1095_v38 = vadd.f32 %v848_v9, %v272_v29  ;;  %v273_v39 = vmul.f32 %v699_v31, %v839_v0 }
  0x45   : > { %776 = vpow2.f32 %v428_v34  ;;  %v430_v59 = vmul.f32 1.442695, %v373_v35  ;;  %v700_v44 = vunpack.c.h.bf16 %v718_v15  ;;  %vm335_vm3 = vcmp.gt.f32.partialorder %v1019_v42, 0.0 }
  0x46   : > { %v765_v40 = vpop.eup %764  ;;  %v493_v43 = vsel %vm333_vm1, %v997_v6, %v624_v32  ;;  %v432_v22 = vmul.f32 1.442695, %v374_v36  ;;  %v375_v46 = vmin.f32 %v1095_v38, 0.0  ;;  %v1106_v47 = vadd.f32 %v848_v9, %v273_v39 }
  0x47   : > { %525 = vst [vmem:[%s939_s26 + $0x88] sm:$0xff] %v493_v43  ;;  %v625_v60 = vadd.f32 -1.0, %v765_v40  ;;  %778 = vpow2.f32 %v430_v59  ;;  %v274_v62 = vmul.f32 %v700_v44, %v839_v0  ;;  %v703_v48 = vunpack.c.l.bf16 %v719_v61 }
  0x48   : > { %780 = vpow2.f32 %v432_v22  ;;  %v434_v49 = vmul.f32 1.442695, %v375_v46  ;;  %v704_v63 = vunpack.c.h.bf16 %v719_v61  ;;  %vm336_vm4 = vcmp.gt.f32.partialorder %v1026_v45, 0.0 }
  0x49   : > { %v767_v23 = vpop.eup %766  ;;  %v494_v6 = vsel %vm334_vm2, %v1006_v17, %v625_v60  ;;  %v376_v51 = vmin.f32 %v1106_v47, 0.0  ;;  %v1116_v10 = vadd.f32 %v848_v9, %v274_v62  ;;  %v275_v53 = vmul.f32 %v703_v48, %v839_v0 }
  0x4a   : > { %v769_v50 = vpop.eup %768  ;;  %526 = vst [vmem:[%s939_s26 + $0x90] sm:$0xff] %v494_v6  ;;  %v626_v24 = vadd.f32 -1.0, %v767_v23  ;;  %782 = vpow2.f32 %v434_v49  ;;  %v276_v17 = vmul.f32 %v704_v63, %v839_v0  ;;  %vm337_vm5 = vcmp.gt.f32.partialorder %v1051_v55, 0.0 }
  0x4b   : > { %v627_v52 = vadd.f32 -1.0, %v769_v50  ;;  %v436_v11 = vmul.f32 1.442695, %v376_v51  ;;  %v377_v56 = vmin.f32 %v1116_v10, 0.0  ;;  %v1127_v58 = vadd.f32 %v848_v9, %v275_v53 }
  0x4c   : > { %v495_v54 = vsel %vm335_vm3, %v1019_v42, %v626_v24  ;;  %v1130_v26 = vadd.f32 %v848_v9, %v276_v17  ;;  %vm338_vm6 = vcmp.gt.f32.partialorder %v1054_v25, 0.0  ;;  %vm339_vm7 = vcmp.gt.f32.partialorder %v1057_v1, 0.0 }
  0x4d   : > { %527 = vst [vmem:[%s939_s26 + $0x98] sm:$0xff] %v495_v54  ;;  %v496_v57 = vsel %vm336_vm4, %v1026_v45, %v627_v52  ;;  %784 = vpow2.f32 %v436_v11  ;;  %v438_v0 = vmul.f32 1.442695, %v377_v56  ;;  %v378_v45 = vmin.f32 %v1127_v58, 0.0 }
  0x4e   : > { %v771_v2 = vpop.eup %770  ;;  %528 = vst [vmem:[%s939_s26 + $0xa0] sm:$0xff] %v496_v57  ;;  %v379_v9 = vmin.f32 %v1130_v26, 0.0  ;;  %vm340_vm8 = vcmp.gt.f32.partialorder %v1072_v8, 0.0  ;;  %vm341_vm9 = vcmp.gt.f32.partialorder %v1081_v19, 0.0  ;;  %vm342_vm10 = vcmp.gt.f32.partialorder %v1084_v20, 0.0 }
  0x4f   : > { %v773_v42 = vpop.eup %772  ;;  %v628_v3 = vadd.f32 -1.0, %v771_v2  ;;  %786 = vpow2.f32 %v438_v0  ;;  %v440_v7 = vmul.f32 1.442695, %v378_v45  ;;  %vm343_vm11 = vcmp.gt.f32.partialorder %v1095_v38, 0.0 }
  0x50   : > { %v775_v27 = vpop.eup %774  ;;  %v629_v4 = vadd.f32 -1.0, %v773_v42  ;;  %v442_v33 = vmul.f32 1.442695, %v379_v9  ;;  %vm344_vm12 = vcmp.gt.f32.partialorder %v1106_v47, 0.0  ;;  %vm345_vm13 = vcmp.gt.f32.partialorder %v1116_v10, 0.0 }
  0x51   : > { %v497_v5 = vsel %vm337_vm5, %v1051_v55, %v628_v3  ;;  %v630_v30 = vadd.f32 -1.0, %v775_v27  ;;  %788 = vpow2.f32 %v440_v7  ;;  %vm346_vm14 = vcmp.gt.f32.partialorder %v1127_v58, 0.0 }
  0x52   : > { %529 = vst [vmem:[%s939_s26 + $0xa8] sm:$0xff] %v497_v5  ;;  %v498_v12 = vsel %vm338_vm6, %v1054_v25, %v629_v4  ;;  %v777_v37 = vpop.eup %776  ;;  %790 = vpow2.f32 %v442_v33  ;;  %vm347_vm15 = vcmp.gt.f32.partialorder %v1130_v26, 0.0 }
  0x53   : > { %530 = vst [vmem:[%s939_s26 + $0xb0] sm:$0xff] %v498_v12  ;;  %v499_v13 = vsel %vm339_vm7, %v1057_v1, %v630_v30  ;;  %v631_v14 = vadd.f32 -1.0, %v777_v37 }
  0x54   : > { %531 = vst [vmem:[%s939_s26 + $0xb8] sm:$0xff] %v499_v13  ;;  %v779_v55 = vpop.eup %778 }
  0x55   : > { %v781_v15 = vpop.eup %780  ;;  %v500_v25 = vsel %vm340_vm8, %v1072_v8, %v631_v14  ;;  %v632_v16 = vadd.f32 -1.0, %v779_v55 }
  0x56   : > { %532 = vst [vmem:[%s939_s26 + $0xc0] sm:$0xff] %v500_v25  ;;  %v633_v1 = vadd.f32 -1.0, %v781_v15 }
  0x57   : > { %v783_v41 = vpop.eup %782  ;;  %v501_v18 = vsel %vm341_vm9, %v1081_v19, %v632_v16 }
  0x58   : > { %533 = vst [vmem:[%s939_s26 + $0xc8] sm:$0xff] %v501_v18  ;;  %v502_v21 = vsel %vm342_vm10, %v1084_v20, %v633_v1  ;;  %v634_v28 = vadd.f32 -1.0, %v783_v41 }
  0x59   : > { %534 = vst [vmem:[%s939_s26 + $0xd0] sm:$0xff] %v502_v21 }
  0x5a   : > { %v785_v29 = vpop.eup %784  ;;  %v503_v8 = vsel %vm343_vm11, %v1095_v38, %v634_v28 }
  0x5b   : > { %535 = vst [vmem:[%s939_s26 + $0xd8] sm:$0xff] %v503_v8  ;;  %v635_v31 = vadd.f32 -1.0, %v785_v29 }
  0x5c   : > { %v787_v32 = vpop.eup %786 }
  0x5d   : > { %v504_v19 = vsel %vm344_vm12, %v1106_v47, %v635_v31  ;;  %v636_v34 = vadd.f32 -1.0, %v787_v32 }
  0x5e   : > { %536 = vst [vmem:[%s939_s26 + $0xe0] sm:$0xff] %v504_v19  ;;  %v789_v20 = vpop.eup %788 }
  0x5f   : > { %v505_v35 = vsel %vm345_vm13, %v1116_v10, %v636_v34  ;;  %v791_v36 = vpop.eup %790  ;;  %v637_v38 = vadd.f32 -1.0, %v789_v20 }
  0x60   : > { %537 = vst [vmem:[%s939_s26 + $0xe8] sm:$0xff] %v505_v35  ;;  %v638_v39 = vadd.f32 -1.0, %v791_v36 }
  0x61   : > { %v506_v61 = vsel %vm346_vm14, %v1127_v58, %v637_v38 }
  0x62   : > { %538 = vst [vmem:[%s939_s26 + $0xf0] sm:$0xff] %v506_v61  ;;  %v507_v40 = vsel %vm347_vm15, %v1130_v26, %v638_v39 }
  0x63   : > { %539 = vst [vmem:[%s939_s26 + $0xf8] sm:$0xff] %v507_v40 }
  0x64 PF: > { %s13_s12 = sadd.s32 1, %s798_s12  }
  0x65   : > { %p10_p4 = scmp.ge.s32.totalorder %s13_s12, 4  }
  0x67   :  { %12 = sbr.rel (!%p10_p4) target bundleno = 1 (0x1), region = 62 }

// kernel: conv_block.2
= control target key start
LH: loop header
LB: loop body
LE: loop exit
PB: predicated region body
PF: predicated region fallthrough
CT: control target
= control target key end

     0   :  { %s1269_s15 = smov 0   ;;  %s1437_s0 = inlined_call_operand.vmem [shape: bf16[512,36], index: 0, kind: input, shape index: {}]   ;;  %s1438_s1 = inlined_call_operand.vmem [shape: bf16[36,128], index: 1, kind: input, shape index: {}]   ;;  %s1439_s2 = inlined_call_operand.vmem [shape: bf16[512,128], index: 2, kind: output, shape index: {0}]   ;;  %s1440_s3 = inlined_call_operand.vmem [shape: f32[2,1,128], index: 3, kind: output, shape index: {1}]   ;;  %s1441_s4 = inlined_call_operand.vmem [shape: f32[2,1,128], index: 4, kind: output, shape index: {2}]  }
   0x1 LB: > { %s1275_s16 = sadd.s32 4294967295, %s1242_s15   ;;  %p943_p0 = scmp.ge.s32.totalorder %s1242_s15, 1  ;;  %s1242_s15 = sphi %s1269_s15, %s15_s15  }
   0x2   : > { %p168_p1 = scmp.lt.s32.totalorder %s1242_s15, 3 }
   0x4   : > { %p169_p2 = pnand %p943_p0, %p168_p1 }
   0x5   : > { %s944_s21 = sshll.u32 (!%p169_p2), %s1275_s16, 5  ;;  %p212_p4 = scmp.lt.s32.totalorder (!%p169_p2), %s1275_s16, 1 }
   0x6   : > { %172 = sbr.rel (%p169_p2) target bundleno = 300 (0x12c), region = 28  ;;  %p201_p3 = scmp.lt.s32.totalorder (!%p169_p2), %s944_s21, 63 }
   0xb   : > { %v1217_v0 = vld [vmem:[%s1438_s1 + $0x10] ss:$0 sps:$4 sm:$0x33]   ;;  %vm400_vm0 = vcmask 1041408   ;;  %v1218_v1 = vld [vmem:[%s1438_s1 + $0x8] sm:$0xff]   ;;  %v1219_v3 = vld [vmem:[%s1438_s1] sm:$0xff]  }
   0xc   : > { %1207 = vmatprep.subr.msk.bf16.mxu0 %vm400_vm0, %v1217_v0  ;;  %v402_v2 = vsel %vm400_vm0, %v1217_v0, 0  ;;  %1208 = vmatprep.subr.msk.bf16.mxu1 %vm400_vm0, %v1217_v0  ;;  %s1443_s21 = smov (!%p201_p3, %s944_s21), 63  ;;  %vm351_vm1 = vcmask 293888   ;;  %s1445_s16 = smov (!%p212_p4, %s1275_s16), 1 }
   0xd   : > { %1164 = vmatpush3.bf16.msra.mxu0 %v402_v2  ;;  %1204 = vmatpush3.bf16.msra.mxu1 %v402_v2  ;;  %s945_s24 = sshll.u32 %s1443_s21, 2  ;;  %s214_s7 = scalar_lea.vmem %s1440_s3, %s1445_s16 }
   0xe   : > { %1165 = vmatprep.subr.bf16.mxu0 %v1218_v1  ;;  %1202 = vmatprep.subr.bf16.mxu1 %v1218_v1  ;;  %s1297_s27 = scalar_lea.vmem %s1437_s0, %s945_s24  ;;  %s1336_s30 = scalar_lea.vmem %s1439_s2, %s945_s24 }
   0xf   : > { %v1220_v4 = vld [vmem:[%s1297_s27] sm:$0xff]   ;;  %v1221_v5 = vld [vmem:[%s1297_s27 + $0x8] sm:$0xff]   ;;  %v1222_v6 = vld [vmem:[%s1297_s27 + $0x10] sm:$0xff]   ;;  %s217_s10 = scalar_lea.vmem %s1441_s4, %s1445_s16 }
  0x10   : > { %1169 = vmatprep.mubr.msk.bf16.mxu0 %vm351_vm1, %v1220_v4  ;;  %v1223_v7 = vld [vmem:[%s1297_s27 + $0x18] sm:$0xff]   ;;  %v1224_v8 = vld [vmem:[%s1297_s27 + $0x20] sm:$0xff]   ;;  %v1229_v10 = vld [vmem:[%s1297_s27 + $0x48] sm:$0xff]  }
  0x11   : > { %1166 = vmatpush3.bf16.msra.mxu0 %v1218_v1  ;;  %1205 = vmatpush3.bf16.msra.mxu1 %v1218_v1  ;;  %v1228_v9 = vld [vmem:[%s1297_s27 + $0x40] sm:$0xff]   ;;  %v1230_v11 = vld [vmem:[%s1297_s27 + $0x50] sm:$0xff]   ;;  %v1231_v12 = vld [vmem:[%s1297_s27 + $0x58] sm:$0xff]  }
  0x12   : > { %1167 = vmatprep.subr.bf16.mxu0 %v1219_v3  ;;  %1203 = vmatprep.subr.bf16.mxu1 %v1219_v3  ;;  %v1232_v13 = vld [vmem:[%s1297_s27 + $0x60] sm:$0xff]   ;;  %v1225_v14 = vld [vmem:[%s1297_s27 + $0x28] sm:$0xff]   ;;  %v1226_v15 = vld [vmem:[%s1297_s27 + $0x30] sm:$0xff]  }
  0x13   : > { %1185 = vmatprep.mubr.msk.bf16.mxu1 %vm351_vm1, %v1228_v9  ;;  %v1233_v16 = vld [vmem:[%s1297_s27 + $0x68] sm:$0xff]   ;;  %v1234_v17 = vld [vmem:[%s1297_s27 + $0x70] sm:$0xff]   ;;  %v1227_v18 = vld [vmem:[%s1297_s27 + $0x38] sm:$0xff]  }
  0x14   : > { %v1235_v19 = vld [vmem:[%s1297_s27 + $0x78] sm:$0xff]  }
  0x15   : > { %1168 = vmatpush3.bf16.msra.mxu0 %v1219_v3  ;;  %1206 = vmatpush3.bf16.msra.mxu1 %v1219_v3 }
  0x18   : > { %1170 = vmatmul.mubr.msk.bf16.vlgmr.msra.gmra.mxu0 %vm351_vm1, %v1221_v5  ;;  %1186 = vmatmul.mubr.msk.bf16.vlgmr.msra.gmra.mxu1 %vm351_vm1, %v1229_v10 }
  0x19   : > { %1173 = vmatprep.mubr.msk.bf16.mxu0 %vm351_vm1, %v1222_v6  ;;  %1189 = vmatprep.mubr.msk.bf16.mxu1 %vm351_vm1, %v1230_v11 }
  0x20   : > { %1174 = vmatmul.mubr.msk.bf16.gmra.mxu0 %vm351_vm1, %v1223_v7  ;;  %1190 = vmatmul.mubr.msk.bf16.gmra.mxu1 %vm351_vm1, %v1231_v12 }
  0x21   : > { %1177 = vmatprep.mubr.msk.bf16.mxu0 %vm351_vm1, %v1224_v8  ;;  %1193 = vmatprep.mubr.msk.bf16.mxu1 %vm351_vm1, %v1232_v13 }
  0x28   : > { %1178 = vmatmul.mubr.msk.bf16.gmra.mxu0 %vm351_vm1, %v1225_v14  ;;  %1194 = vmatmul.mubr.msk.bf16.gmra.mxu1 %vm351_vm1, %v1233_v16 }
  0x29   : > { %1181 = vmatprep.mubr.msk.bf16.mxu0 %vm351_vm1, %v1226_v15  ;;  %1197 = vmatprep.mubr.msk.bf16.mxu1 %vm351_vm1, %v1234_v17 }
  0x30   : > { %1182 = vmatmul.mubr.msk.bf16.gmra.mxu0 %vm351_vm1, %v1227_v18  ;;  %1198 = vmatmul.mubr.msk.bf16.gmra.mxu1 %vm351_vm1, %v1235_v19 }
  0xd8   : > { %v1171_v20 = vpop.f32.mrf.mxu0  ;;  %v1338_v25 = vpop.f32.mrf.mxu1 }
  0xd9   : > { %v765_v32 = vmul.f32 %v1171_v20, %v1171_v20 }
  0xda   : > { %v438_v21 = vpop.f32.mrf.mxu0  ;;  %v1341_v31 = vpop.f32.mrf.mxu1 }
  0xdb   : > { %v763_v26 = vmul.f32 %v438_v21, %v438_v21 }
  0xdc   : > { %v1172_v22 = vpop.f32.mrf.mxu0  ;;  %v1344_v36 = vpop.f32.mrf.mxu1 }
  0xdd   : > { %v1057_v23 = vpack.c.bf16 %v1172_v22, %v1171_v20  ;;  %v766_v37 = vmul.f32 %v1172_v22, %v1172_v22  ;;  %v1097_v40 = vpack.c.bf16 %v1344_v36, %v1338_v25 }
  0xde   : > { %v441_v24 = vpop.f32.mrf.mxu0  ;;  %v1348_v42 = vpop.f32.mrf.mxu1 }
  0xdf   : > { %1129 = vst [vmem:[%s1336_s30 + $0x8] sm:$0xff] %v1057_v23   ;;  %v1052_v27 = vpack.c.bf16 %v441_v24, %v438_v21  ;;  %v725_v28 = vadd.f32 %v441_v24, %v438_v21  ;;  %v764_v29 = vmul.f32 %v441_v24, %v441_v24  ;;  %1137 = vst [vmem:[%s1336_s30 + $0x48] sm:$0xff] %v1097_v40  }
  0xe0   : > { %v1175_v30 = vpop.f32.mrf.mxu0  ;;  %v1092_v48 = vpack.c.bf16 %v1348_v42, %v1341_v31  ;;  %v1353_v49 = vpop.f32.mrf.mxu1 }
  0xe1   : > { %1053 = vst [vmem:[%s1336_s30] sm:$0xff] %v1052_v27   ;;  %v726_v33 = vadd.f32 %v1171_v20, %v725_v28  ;;  %v795_v34 = vadd.f32 %v764_v29, %v763_v26  ;;  %v769_v56 = vmul.f32 %v1175_v30, %v1175_v30 }
  0xe2   : > { %v454_v35 = vpop.f32.mrf.mxu0  ;;  %1136 = vst [vmem:[%s1336_s30 + $0x40] sm:$0xff] %v1092_v48   ;;  %v1357_v55 = vpop.f32.mrf.mxu1 }
  0xe3   : > { %v796_v38 = vadd.f32 %v795_v34, %v765_v32  ;;  %v727_v39 = vadd.f32 %v1172_v22, %v726_v33  ;;  %v767_v44 = vmul.f32 %v454_v35, %v454_v35 }
  0xe4   : > { %v1176_v41 = vpop.f32.mrf.mxu0  ;;  %v1360_v60 = vpop.f32.mrf.mxu1 }
  0xe5   : > { %v728_v43 = vadd.f32 %v727_v39, %v454_v35  ;;  %v797_v45 = vadd.f32 %v796_v38, %v766_v37  ;;  %v1067_v46 = vpack.c.bf16 %v1176_v41, %v1175_v30  ;;  %v770_v61 = vmul.f32 %v1176_v41, %v1176_v41 }
  0xe6   : > { %v457_v47 = vpop.f32.mrf.mxu0  ;;  %v1107_v0 = vpack.c.bf16 %v1360_v60, %v1353_v49  ;;  %v1364_v2 = vpop.f32.mrf.mxu1 }
  0xe7   : > { %v798_v50 = vadd.f32 %v797_v45, %v767_v44  ;;  %1131 = vst [vmem:[%s1336_s30 + $0x18] sm:$0xff] %v1067_v46   ;;  %v1062_v51 = vpack.c.bf16 %v457_v47, %v454_v35  ;;  %v729_v52 = vadd.f32 %v728_v43, %v457_v47  ;;  %v768_v53 = vmul.f32 %v457_v47, %v457_v47 }
  0xe8   : > { %v1179_v54 = vpop.f32.mrf.mxu0  ;;  %1139 = vst [vmem:[%s1336_s30 + $0x58] sm:$0xff] %v1107_v0   ;;  %v1102_v8 = vpack.c.bf16 %v1364_v2, %v1357_v55  ;;  %v1369_v9 = vpop.f32.mrf.mxu1 }
  0xe9   : > { %1130 = vst [vmem:[%s1336_s30 + $0x10] sm:$0xff] %v1062_v51   ;;  %v730_v57 = vadd.f32 %v1175_v30, %v729_v52  ;;  %v799_v58 = vadd.f32 %v798_v50, %v768_v53  ;;  %v773_v16 = vmul.f32 %v1179_v54, %v1179_v54  ;;  %v779_v53 = vmul.f32 %v1341_v31, %v1341_v31 }
  0xea   : > { %v470_v59 = vpop.f32.mrf.mxu0  ;;  %1138 = vst [vmem:[%s1336_s30 + $0x50] sm:$0xff] %v1102_v8   ;;  %v1373_v15 = vpop.f32.mrf.mxu1  ;;  %v784_v8 = vmul.f32 %v1364_v2, %v1364_v2 }
  0xeb   : > { %v800_v62 = vadd.f32 %v799_v58, %v769_v56  ;;  %v731_v63 = vadd.f32 %v1176_v41, %v730_v57  ;;  %v771_v4 = vmul.f32 %v470_v59, %v470_v59 }
  0xec   : > { %v1180_v1 = vpop.f32.mrf.mxu0  ;;  %v1376_v20 = vpop.f32.mrf.mxu1 }
  0xed   : > { %v732_v3 = vadd.f32 %v731_v63, %v470_v59  ;;  %v801_v5 = vadd.f32 %v800_v62, %v770_v61  ;;  %v1077_v6 = vpack.c.bf16 %v1180_v1, %v1179_v54  ;;  %v774_v21 = vmul.f32 %v1180_v1, %v1180_v1 }
  0xee   : > { %v473_v7 = vpop.f32.mrf.mxu0  ;;  %v1117_v24 = vpack.c.bf16 %v1376_v20, %v1369_v9  ;;  %v537_v27 = vpop.f32.mrf.mxu1  ;;  %v781_v62 = vmul.f32 %v1338_v25, %v1338_v25 }
  0xef   : > { %v802_v10 = vadd.f32 %v801_v5, %v771_v4  ;;  %1133 = vst [vmem:[%s1336_s30 + $0x28] sm:$0xff] %v1077_v6   ;;  %v1072_v11 = vpack.c.bf16 %v473_v7, %v470_v59  ;;  %v733_v12 = vadd.f32 %v732_v3, %v473_v7  ;;  %v772_v13 = vmul.f32 %v473_v7, %v473_v7 }
  0xf0   : > { %v1183_v14 = vpop.f32.mrf.mxu0  ;;  %1141 = vst [vmem:[%s1336_s30 + $0x68] sm:$0xff] %v1117_v24   ;;  %v1112_v34 = vpack.c.bf16 %v537_v27, %v1373_v15  ;;  %v1382_v35 = vpop.f32.mrf.mxu1  ;;  %v780_v59 = vmul.f32 %v1348_v42, %v1348_v42  ;;  %v783_v5 = vmul.f32 %v1357_v55, %v1357_v55 }
  0xf1   : > { %1132 = vst [vmem:[%s1336_s30 + $0x20] sm:$0xff] %v1072_v11   ;;  %v734_v17 = vadd.f32 %v1179_v54, %v733_v12  ;;  %v803_v18 = vadd.f32 %v802_v10, %v772_v13  ;;  %v777_v43 = vmul.f32 %v1183_v14, %v1183_v14 }
  0xf2   : > { %v486_v19 = vpop.f32.mrf.mxu0  ;;  %1140 = vst [vmem:[%s1336_s30 + $0x60] sm:$0xff] %v1112_v34   ;;  %v550_v41 = vpop.f32.mrf.mxu1 }
  0xf3   : > { %v804_v22 = vadd.f32 %v803_v18, %v773_v16  ;;  %v735_v23 = vadd.f32 %v1180_v1, %v734_v17  ;;  %v775_v29 = vmul.f32 %v486_v19, %v486_v19  ;;  %v782_v1 = vmul.f32 %v1344_v36, %v1344_v36 }
  0xf4   : > { %v1184_v26 = vpop.f32.mrf.mxu0  ;;  %v1200_v46 = vpop.f32.mrf.mxu1  ;;  %v788_v18 = vmul.f32 %v537_v27, %v537_v27 }
  0xf5   : > { %v736_v28 = vadd.f32 %v735_v23, %v486_v19  ;;  %v805_v30 = vadd.f32 %v804_v22, %v774_v21  ;;  %v1087_v32 = vpack.c.bf16 %v1184_v26, %v1183_v14  ;;  %v778_v47 = vmul.f32 %v1184_v26, %v1184_v26 }
  0xf6   : > { %v489_v33 = vpop.f32.mrf.mxu0  ;;  %v1127_v51 = vpack.c.bf16 %v1200_v46, %v1382_v35  ;;  %v553_v52 = vpop.f32.mrf.mxu1  ;;  %v790_v22 = vmul.f32 %v1376_v20, %v1376_v20 }
  0xf7   : > { %v806_v37 = vadd.f32 %v805_v30, %v775_v29  ;;  %1135 = vst [vmem:[%s1336_s30 + $0x38] sm:$0xff] %v1087_v32   ;;  %v1082_v38 = vpack.c.bf16 %v489_v33, %v486_v19  ;;  %v737_v39 = vadd.f32 %v736_v28, %v489_v33  ;;  %v776_v40 = vmul.f32 %v489_v33, %v489_v33 }
  0xf8   : > { %1143 = vst [vmem:[%s1336_s30 + $0x78] sm:$0xff] %v1127_v51   ;;  %v1122_v57 = vpack.c.bf16 %v553_v52, %v550_v41  ;;  %v789_v19 = vmul.f32 %v1369_v9, %v1369_v9  ;;  %v793_v30 = vmul.f32 %v1382_v35, %v1382_v35  ;;  %v794_v33 = vmul.f32 %v1200_v46, %v1200_v46 }
  0xf9   : > { %1134 = vst [vmem:[%s1336_s30 + $0x30] sm:$0xff] %v1082_v38   ;;  %v738_v44 = vadd.f32 %v1183_v14, %v737_v39  ;;  %v807_v45 = vadd.f32 %v806_v37, %v776_v40  ;;  %v787_v14 = vmul.f32 %v1373_v15, %v1373_v15 }
  0xfa   : > { %1142 = vst [vmem:[%s1336_s30 + $0x70] sm:$0xff] %v1122_v57  }
  0xfb   : > { %v739_v48 = vadd.f32 %v1184_v26, %v738_v44  ;;  %v808_v50 = vadd.f32 %v807_v45, %v777_v43  ;;  %v791_v26 = vmul.f32 %v550_v41, %v550_v41 }
  0xfd   : > { %v809_v54 = vadd.f32 %v808_v50, %v778_v47  ;;  %v740_v56 = vadd.f32 %v739_v48, %v1341_v31 }
  0xff   : > { %v741_v58 = vadd.f32 %v740_v56, %v1348_v42  ;;  %v810_v61 = vadd.f32 %v809_v54, %v779_v53 }
 0x101   : > { %v742_v63 = vadd.f32 %v1338_v25, %v741_v58  ;;  %v811_v0 = vadd.f32 %v810_v61, %v780_v59  ;;  %v785_v25 = vmul.f32 %v1353_v49, %v1353_v49 }
 0x103   : > { %v812_v3 = vadd.f32 %v811_v0, %v781_v62  ;;  %v743_v31 = vadd.f32 %v1344_v36, %v742_v63  ;;  %v786_v36 = vmul.f32 %v1360_v60, %v1360_v60 }
 0x105   : > { %v744_v4 = vadd.f32 %v743_v31, %v1357_v55  ;;  %v813_v42 = vadd.f32 %v812_v3, %v782_v1 }
 0x107   : > { %v814_v6 = vadd.f32 %v813_v42, %v783_v5  ;;  %v745_v7 = vadd.f32 %v744_v4, %v1364_v2 }
 0x109   : > { %v746_v10 = vadd.f32 %v1353_v49, %v745_v7  ;;  %v815_v11 = vadd.f32 %v814_v6, %v784_v8 }
 0x10b   : > { %v816_v12 = vadd.f32 %v815_v11, %v785_v25  ;;  %v747_v13 = vadd.f32 %v1360_v60, %v746_v10 }
 0x10d   : > { %v748_v55 = vadd.f32 %v747_v13, %v1373_v15  ;;  %v817_v16 = vadd.f32 %v816_v12, %v786_v36 }
 0x10f   : > { %v818_v17 = vadd.f32 %v817_v16, %v787_v14  ;;  %v749_v2 = vadd.f32 %v748_v55, %v537_v27  ;;  %v792_v27 = vmul.f32 %v553_v52, %v553_v52 }
 0x111   : > { %v750_v49 = vadd.f32 %v1369_v9, %v749_v2  ;;  %v819_v21 = vadd.f32 %v818_v17, %v788_v18 }
 0x113   : > { %v820_v23 = vadd.f32 %v819_v21, %v789_v19  ;;  %v751_v60 = vadd.f32 %v1376_v20, %v750_v49 }
 0x115   : > { %v752_v24 = vadd.f32 %v751_v60, %v550_v41  ;;  %v821_v15 = vadd.f32 %v820_v23, %v790_v22 }
 0x117   : > { %v822_v28 = vadd.f32 %v821_v15, %v791_v26  ;;  %v753_v29 = vadd.f32 %v752_v24, %v553_v52 }
 0x119   : > { %v754_v9 = vadd.f32 %v1382_v35, %v753_v29  ;;  %v823_v32 = vadd.f32 %v822_v28, %v792_v27 }
 0x11b   : > { %v755_v34 = vadd.f32 %v1200_v46, %v754_v9  ;;  %v824_v37 = vadd.f32 %v823_v32, %v793_v30 }
 0x11d   : > { %v756_v38 = vrot.slane %v755_v34, 4  ;;  %v825_v39 = vadd.f32 %v824_v37, %v794_v33 }
 0x11f   : > { %v757_v20 = vadd.f32 %v756_v38, %v755_v34  ;;  %v826_v40 = vrot.slane %v825_v39, 4 }
 0x121   : > { %v758_v41 = vrot.slane %v757_v20, 2  ;;  %v827_v43 = vadd.f32 %v826_v40, %v825_v39 }
 0x123   : > { %v759_v44 = vadd.f32 %v758_v41, %v757_v20  ;;  %v828_v45 = vrot.slane %v827_v43, 2 }
 0x125   : > { %v760_v47 = vrot.slane %v759_v44, 1  ;;  %v829_v48 = vadd.f32 %v828_v45, %v827_v43 }
 0x127   : > { %v761_v35 = vadd.f32 %v760_v47, %v759_v44  ;;  %v830_v50 = vrot.slane %v829_v48, 1 }
 0x129   : > { %762 = vst [vmem:[%s214_s7] sm:$0x1] %v761_v35  ;;  %v831_v46 = vadd.f32 %v830_v50, %v829_v48 }
 0x12b   : > { %832 = vst [vmem:[%s217_s10] sm:$0x1] %v831_v46 }
 0x12c PF: > { %s15_s15 = sadd.s32 1, %s1242_s15  }
 0x12d   : > { %p12_p5 = scmp.ge.s32.totalorder %s15_s15, 4  }
 0x12f   :  { %14 = sbr.rel (!%p12_p5) target bundleno = 1 (0x1), region = 82 }

</bundles_post_ra>
